<compile_context>
chip_gen: v7x
topology: tpu7x:2x2x1
jax: 0.10.0
libtpu: 0.0.40
codegen_flags: <defaults>
</compile_context>

<pallas_src>
import functools

import jax
import jax.numpy as jnp
import numpy as np
from jax.experimental import pallas as pl
from jax.experimental.pallas import tpu as pltpu

EPS = 1e-5


def _round_up(x, m):
    return ((x + m - 1) // m) * m


def _vmem_budget(nbytes):
    # Clamp so the limit is valid on every generation (v7x physical VMEM = 64 MiB).
    return int(min(max(nbytes, 4 * 1024 * 1024), 64 * 1024 * 1024))


def _weight_bytes(params):
    return sum(int(p.size) * p.dtype.itemsize for p in params)


# ------------------------- fused single-read kernel -------------------------

def gam_fused_kernel(x_ref, w1_ref, w2_ref, wfx_ref, wfg_ref, bf_ref, o_ref, *, hw):
    # x_ref: (C, HW_pad) -- leading batch dim squeezed away by the BlockSpec.
    x = x_ref[...].astype(jnp.float32)

    # --- calc_mean_std, single pass: sum and sum-of-squares (padding lanes are 0) ---
    s = jnp.sum(x, axis=1, keepdims=True)          # (C, 1)
    ss = jnp.sum(x * x, axis=1, keepdims=True)     # (C, 1)
    mean = s * (1.0 / hw)
    var = (ss - s * mean) / (hw - 1) + EPS         # unbiased, like torch .var()
    std = jnp.sqrt(var)

    # --- self.conv: 1x1 conv -> relu -> 1x1 conv on the (2C,) global vector ---
    # Column form kept on purpose: the result broadcasts directly over spatial lanes.
    g = jnp.concatenate([mean, std], axis=0)       # (2C, 1)
    h = jnp.maximum(jnp.dot(w1_ref[...], g, preferred_element_type=jnp.float32), 0.0)
    gvec = jnp.dot(w2_ref[...], h, preferred_element_type=jnp.float32)       # (out_nc, 1)

    # --- self.fuse: Wfx @ x + (Wfg @ gvec + b) broadcast over spatial ---
    extra = jnp.dot(wfg_ref[...], gvec, preferred_element_type=jnp.float32) + bf_ref[...]
    out = jnp.dot(wfx_ref[...], x, preferred_element_type=jnp.float32) + extra
    o_ref[...] = out.astype(o_ref.dtype)


# ------------------------- tiled two-pass fallback ---------------------------

def gam_stats_kernel(x_ref, sums_ref):
    # x_ref: (C, T) tile of batch n; sums_ref: (C, 2) resident accumulator (sum, sumsq).
    t = pl.program_id(1)

    @pl.when(t == 0)
    def _():
        sums_ref[...] = jnp.zeros_like(sums_ref)

    x = x_ref[...].astype(jnp.float32)
    s = jnp.sum(x, axis=1, keepdims=True)          # (C, 1)
    ss = jnp.sum(x * x, axis=1, keepdims=True)     # (C, 1)
    sums_ref[...] += jnp.concatenate([s, ss], axis=1)


def gam_fuse_kernel(x_ref, wfx_ref, extra_ref, o_ref):
    # x_ref: (C, T); extra_ref: (out_nc, 1) per-batch global term (broadcast over lanes).
    x = x_ref[...].astype(jnp.float32)
    out = jnp.dot(wfx_ref[...], x, preferred_element_type=jnp.float32)
    o_ref[...] = (out + extra_ref[...]).astype(o_ref.dtype)


# ------------------------------- wrapper -------------------------------------

def gam_forward(x, params, *, tile=2048, force_tiled=False):
    """x: (N, C, H, W) float32.  Returns (N, out_nc, H, W)."""
    w1, w2, wfx, wfg, bf = params
    N, C, H, W = x.shape
    HW = H * W
    out_nc = wfx.shape[0]
    wbytes = _weight_bytes(params)

    hw_pad_fused = _round_up(HW, 128)
    fused_bytes = int(1.25 * (3 * (C + out_nc) * hw_pad_fused * 4 + 4 * wbytes))
    use_fused = (not force_tiled) and fused_bytes <= 48 * 1024 * 1024

    x2 = x.reshape(N, C, HW)

    if use_fused:
        hw_pad = hw_pad_fused
        if hw_pad != HW:
            x2 = jnp.pad(x2, ((0, 0), (0, 0), (0, hw_pad - HW)))

        out = pl.pallas_call(
            functools.partial(gam_fused_kernel, hw=HW),
            out_shape=jax.ShapeDtypeStruct((N, out_nc, hw_pad), x.dtype),
            grid=(N,),
            in_specs=[
                pl.BlockSpec((pl.Squeezed(), C, hw_pad), lambda n: (n, 0, 0)),
                pl.BlockSpec(w1.shape, lambda n: (0, 0)),
                pl.BlockSpec(w2.shape, lambda n: (0, 0)),
                pl.BlockSpec(wfx.shape, lambda n: (0, 0)),
                pl.BlockSpec(wfg.shape, lambda n: (0, 0)),
                pl.BlockSpec(bf.shape, lambda n: (0, 0)),
            ],
            out_specs=pl.BlockSpec((pl.Squeezed(), out_nc, hw_pad), lambda n: (n, 0, 0)),
            compiler_params=pltpu.CompilerParams(
                dimension_semantics=("parallel",),
                vmem_limit_bytes=_vmem_budget(fused_bytes),
            ),
        )(x2, w1, w2, wfx, wfg, bf)
    else:
        # Lane-dense HW tiles; pad spatial with zeros (harmless for sum/sumsq, sliced off).
        T = min(_round_up(tile, 128), _round_up(HW, 128))
        hw_pad = _round_up(HW, T)
        if hw_pad != HW:
            x2 = jnp.pad(x2, ((0, 0), (0, 0), (0, hw_pad - HW)))
        n_t = hw_pad // T

        # ---- pass 1: per-channel (sum, sumsq), accumulated across HW tiles ----
        stats_vmem = _vmem_budget(int(1.5 * (3 * C * T * 4 + C * 2 * 4)))
        sums = pl.pallas_call(
            gam_stats_kernel,
            out_shape=jax.ShapeDtypeStruct((N, C, 2), jnp.float32),
            grid=(N, n_t),
            in_specs=[pl.BlockSpec((pl.Squeezed(), C, T), lambda n, t: (n, 0, t))],
            out_specs=pl.BlockSpec((pl.Squeezed(), C, 2), lambda n, t: (n, 0, 0)),
            compiler_params=pltpu.CompilerParams(
                dimension_semantics=("parallel", "arbitrary"),
                vmem_limit_bytes=stats_vmem,
            ),
        )(x2)

        # ---- tiny global path in plain JAX at (N, C) scale ----
        s, ss = sums[:, :, 0], sums[:, :, 1]                   # (N, C)
        mean = s / HW
        var = (ss - s * mean) / (HW - 1) + EPS
        std = jnp.sqrt(var)
        g = jnp.concatenate([mean, std], axis=1)               # (N, 2C)
        h = jnp.maximum(g @ w1.T, 0.0)
        gvec = h @ w2.T                                        # (N, out_nc)
        extra = (gvec @ wfg.T + bf[:, 0])[:, :, None]          # (N, out_nc, 1)

        # ---- pass 2: Wfx @ x_tile + extra[n], streamed over lane-dense tiles ----
        fuse_vmem = _vmem_budget(int(1.5 * (3 * (C + out_nc) * T * 4 + 4 * wbytes)))
        out = pl.pallas_call(
            gam_fuse_kernel,
            out_shape=jax.ShapeDtypeStruct((N, out_nc, hw_pad), x.dtype),
            grid=(N, n_t),
            in_specs=[
                pl.BlockSpec((pl.Squeezed(), C, T), lambda n, t: (n, 0, t)),
                pl.BlockSpec(wfx.shape, lambda n, t: (0, 0)),
                pl.BlockSpec((pl.Squeezed(), out_nc, 1), lambda n, t: (n, 0, 0)),
            ],
            out_specs=pl.BlockSpec((pl.Squeezed(), out_nc, T), lambda n, t: (n, 0, t)),
            compiler_params=pltpu.CompilerParams(
                dimension_semantics=("parallel", "parallel"),
                vmem_limit_bytes=fuse_vmem,
            ),
        )(x2, wfx, extra)

    return out[:, :, :HW].reshape(N, out_nc, H, W)


# ------------------------------ reference / init -----------------------------

def gam_reference(x, params):
    """Pure-JAX reference mirroring the PyTorch forward (for verification)."""
    w1, w2, wfx, wfg, bf = params
    N, C, H, W = x.shape
    xf = x.reshape(N, C, -1)
    mean = xf.mean(axis=2)                                # (N, C)
    var = xf.var(axis=2, ddof=1) + EPS                    # unbiased, like torch .var()
    std = jnp.sqrt(var)
    g = jnp.concatenate([mean, std], axis=1)              # (N, 2C)
    h = jnp.maximum(g @ w1.T, 0.0)                        # (N, C//r)
    o = h @ w2.T                                          # (N, out_nc)
    extra = o @ wfg.T + bf[:, 0]                          # (N, out_nc)
    out = jnp.einsum("oc,nchw->nohw", wfx, x) + extra[:, :, None, None]
    return out


def init_params(key, in_nc, out_nc, reduction=8):
    mid = in_nc // reduction
    k1, k2, k3, k4 = jax.random.split(key, 4)
    # conv1: (mid, 2*in_nc) ; conv2: (out_nc, mid)   (1x1 conv kernels, no bias)
    w1 = jax.random.normal(k1, (mid, 2 * in_nc), jnp.float32) * (1.0 / np.sqrt(2 * in_nc))
    w2 = jax.random.normal(k2, (out_nc, mid), jnp.float32) * (1.0 / np.sqrt(max(mid, 1)))
    # fuse: (out_nc, 2*in_nc) with bias; split into x-part and global-part
    wf = jax.random.normal(k3, (out_nc, 2 * in_nc), jnp.float32) * (1.0 / np.sqrt(2 * in_nc))
    wfx = wf[:, :in_nc]                                   # multiplies x
    wfg = wf[:, in_nc:]                                   # multiplies expanded global vec
    bf = jax.random.normal(k4, (out_nc, 1), jnp.float32) * 0.1
    return (w1, w2, wfx, wfg, bf)


if __name__ == "__main__":
    # expand_as in the PyTorch module implies out_nc == in_nc
    N, C, H, W = 2, 16, 16, 16
    in_nc = out_nc = C
    reduction = 8

    key = jax.random.PRNGKey(0)
    kx, kp = jax.random.split(key)
    x = jax.random.normal(kx, (N, C, H, W), jnp.float32)
    params = init_params(kp, in_nc, out_nc, reduction)

    ref = gam_reference(x, params)

    # Fused single-read path (auto-selected when the (C, H*W) block fits VMEM).
    out_fused = jax.block_until_ready(gam_forward(x, params))
    np.testing.assert_allclose(np.asarray(out_fused), np.asarray(ref), rtol=1e-4, atol=1e-4)

    # Tiled two-pass fallback (used for large spatial sizes / v7x's 64 MiB VMEM);
    # forced here with a small tile so the accumulator path is exercised too.
    out_tiled = jax.block_until_ready(gam_forward(x, params, tile=128, force_tiled=True))
    np.testing.assert_allclose(np.asarray(out_tiled), np.asarray(ref), rtol=1e-4, atol=1e-4)

    print("KERNEL_OK")
</pallas_src>

<mosaic_0001>
module attributes {stable_mosaic.version = 11 : i64} {
  func.func @gam_fused_kernel(%arg0: i32, %arg1: memref<1x16x256xf32, #tpu.memory_space<vmem>>, %arg2: memref<2x32xf32, #tpu.memory_space<vmem>>, %arg3: memref<16x2xf32, #tpu.memory_space<vmem>>, %arg4: memref<16x16xf32, #tpu.memory_space<vmem>>, %arg5: memref<16x16xf32, #tpu.memory_space<vmem>>, %arg6: memref<16x1xf32, #tpu.memory_space<vmem>>, %arg7: memref<1x16x256xf32, #tpu.memory_space<vmem>>) attributes {dimension_semantics = [#tpu.dimension_semantics<parallel>], iteration_bounds = array<i64: 2>, scalar_prefetch = 0 : i64, scratch_operands = 0 : i64, tpu.core_type = #tpu.core_type<tc>, window_params = [{transform_indices = @transform_0, window_bounds = array<i64: 1, 16, 256>}, {pipeline_mode = #tpu.pipeline_mode<synchronous>, transform_indices = @transform_1, window_bounds = array<i64: 2, 32>}, {pipeline_mode = #tpu.pipeline_mode<synchronous>, transform_indices = @transform_2, window_bounds = array<i64: 16, 2>}, {pipeline_mode = #tpu.pipeline_mode<synchronous>, transform_indices = @transform_3, window_bounds = array<i64: 16, 16>}, {pipeline_mode = #tpu.pipeline_mode<synchronous>, transform_indices = @transform_4, window_bounds = array<i64: 16, 16>}, {pipeline_mode = #tpu.pipeline_mode<synchronous>, transform_indices = @transform_5, window_bounds = array<i64: 16, 1>}, {transform_indices = @transform_6, window_bounds = array<i64: 1, 16, 256>}]} {
    %c0 = arith.constant 0 : index
    %c0_0 = arith.constant 0 : index
    %c0_1 = arith.constant 0 : index
    %0 = vector.load %arg1[%c0, %c0_0, %c0_1] : memref<1x16x256xf32, #tpu.memory_space<vmem>>, vector<1x16x256xf32>
    %1 = vector.shape_cast %0 : vector<1x16x256xf32> to vector<16x256xf32>
    %cst = arith.constant dense<0.000000e+00> : vector<16xf32>
    %2 = vector.multi_reduction <add>, %1, %cst [1] : vector<16x256xf32> to vector<16xf32>
    %3 = vector.shape_cast %2 : vector<16xf32> to vector<16x1xf32>
    %4 = arith.mulf %1, %1 : vector<16x256xf32>
    %cst_2 = arith.constant dense<0.000000e+00> : vector<16xf32>
    %5 = vector.multi_reduction <add>, %4, %cst_2 [1] : vector<16x256xf32> to vector<16xf32>
    %6 = vector.shape_cast %5 : vector<16xf32> to vector<16x1xf32>
    %cst_3 = arith.constant 3.906250e-03 : f32
    %7 = vector.broadcast %cst_3 : f32 to vector<16x1xf32>
    %8 = arith.mulf %3, %7 : vector<16x1xf32>
    %9 = arith.mulf %3, %8 : vector<16x1xf32>
    %10 = arith.subf %6, %9 : vector<16x1xf32>
    %cst_4 = arith.constant 2.550000e+02 : f32
    %11 = vector.broadcast %cst_4 : f32 to vector<16x1xf32>
    %12 = arith.divf %10, %11 : vector<16x1xf32>
    %cst_5 = arith.constant 9.99999974E-6 : f32
    %13 = vector.broadcast %cst_5 : f32 to vector<16x1xf32>
    %14 = arith.addf %12, %13 : vector<16x1xf32>
    %15 = math.sqrt %14 : vector<16x1xf32>
    %16 = tpu.concatenate %8, %15 in 0 : vector<16x1xf32>, vector<16x1xf32> -> vector<32x1xf32>
    %c0_6 = arith.constant 0 : index
    %c0_7 = arith.constant 0 : index
    %17 = vector.load %arg2[%c0_6, %c0_7] : memref<2x32xf32, #tpu.memory_space<vmem>>, vector<2x32xf32>
    %cst_8 = arith.constant dense<0.000000e+00> : vector<2x1xf32>
    %18 = tpu.matmul %17, %16, %cst_8 {dimension_numbers = #tpu.dot_dimension_numbers<[1], [0], [0], [1], [0, 0, 1, 1], [], []>} : vector<2x32xf32>, vector<32x1xf32>, vector<2x1xf32> -> vector<2x1xf32>
    %cst_9 = arith.constant 0.000000e+00 : f32
    %19 = vector.broadcast %cst_9 : f32 to vector<2x1xf32>
    %20 = arith.maximumf %18, %19 : vector<2x1xf32>
    %c0_10 = arith.constant 0 : index
    %c0_11 = arith.constant 0 : index
    %21 = vector.load %arg3[%c0_10, %c0_11] : memref<16x2xf32, #tpu.memory_space<vmem>>, vector<16x2xf32>
    %cst_12 = arith.constant dense<0.000000e+00> : vector<16x1xf32>
    %22 = tpu.matmul %21, %20, %cst_12 {dimension_numbers = #tpu.dot_dimension_numbers<[1], [0], [0], [1], [0, 0, 1, 1], [], []>} : vector<16x2xf32>, vector<2x1xf32>, vector<16x1xf32> -> vector<16x1xf32>
    %c0_13 = arith.constant 0 : index
    %c0_14 = arith.constant 0 : index
    %23 = vector.load %arg5[%c0_13, %c0_14] : memref<16x16xf32, #tpu.memory_space<vmem>>, vector<16x16xf32>
    %cst_15 = arith.constant dense<0.000000e+00> : vector<16x1xf32>
    %24 = tpu.matmul %23, %22, %cst_15 {dimension_numbers = #tpu.dot_dimension_numbers<[1], [0], [0], [1], [0, 0, 1, 1], [], []>} : vector<16x16xf32>, vector<16x1xf32>, vector<16x1xf32> -> vector<16x1xf32>
    %c0_16 = arith.constant 0 : index
    %c0_17 = arith.constant 0 : index
    %25 = vector.load %arg6[%c0_16, %c0_17] : memref<16x1xf32, #tpu.memory_space<vmem>>, vector<16x1xf32>
    %26 = arith.addf %24, %25 : vector<16x1xf32>
    %c0_18 = arith.constant 0 : index
    %c0_19 = arith.constant 0 : index
    %27 = vector.load %arg4[%c0_18, %c0_19] : memref<16x16xf32, #tpu.memory_space<vmem>>, vector<16x16xf32>
    %cst_20 = arith.constant dense<0.000000e+00> : vector<16x256xf32>
    %28 = tpu.matmul %27, %1, %cst_20 {dimension_numbers = #tpu.dot_dimension_numbers<[1], [0], [0], [1], [0, 0, 1, 1], [], []>} : vector<16x16xf32>, vector<16x256xf32>, vector<16x256xf32> -> vector<16x256xf32>
    %29 = vector.broadcast %26 : vector<16x1xf32> to vector<16x256xf32>
    %30 = arith.addf %28, %29 : vector<16x256xf32>
    %c0_21 = arith.constant 0 : index
    %c0_22 = arith.constant 0 : index
    %c0_23 = arith.constant 0 : index
    %31 = vector.load %arg7[%c0_21, %c0_22, %c0_23] : memref<1x16x256xf32, #tpu.memory_space<vmem>>, vector<1x16x256xf32>
    %32 = vector.shape_cast %31 : vector<1x16x256xf32> to vector<16x256xf32>
    %33 = vector.shape_cast %30 : vector<16x256xf32> to vector<1x16x256xf32>
    tpu.vector_store %arg7[%c0_21, %c0_22, %c0_23], %33 {strides = array<i32>} : memref<1x16x256xf32, #tpu.memory_space<vmem>>, vector<1x16x256xf32>,
    return
  }
  func.func @transform_0(%arg0: i32) -> (i32, i32, i32) {
    %c0_i32 = arith.constant 0 : i32
    %c0_i32_0 = arith.constant 0 : i32
    %c0_i32_1 = arith.constant 0 : i32
    return %arg0, %c0_i32, %c0_i32_0 : i32, i32, i32
  }
  func.func @transform_1(%arg0: i32) -> (i32, i32) {
    %c0_i32 = arith.constant 0 : i32
    %c0_i32_0 = arith.constant 0 : i32
    %c0_i32_1 = arith.constant 0 : i32
    return %c0_i32, %c0_i32_0 : i32, i32
  }
  func.func @transform_2(%arg0: i32) -> (i32, i32) {
    %c0_i32 = arith.constant 0 : i32
    %c0_i32_0 = arith.constant 0 : i32
    %c0_i32_1 = arith.constant 0 : i32
    return %c0_i32, %c0_i32_0 : i32, i32
  }
  func.func @transform_3(%arg0: i32) -> (i32, i32) {
    %c0_i32 = arith.constant 0 : i32
    %c0_i32_0 = arith.constant 0 : i32
    %c0_i32_1 = arith.constant 0 : i32
    return %c0_i32, %c0_i32_0 : i32, i32
  }
  func.func @transform_4(%arg0: i32) -> (i32, i32) {
    %c0_i32 = arith.constant 0 : i32
    %c0_i32_0 = arith.constant 0 : i32
    %c0_i32_1 = arith.constant 0 : i32
    return %c0_i32, %c0_i32_0 : i32, i32
  }
  func.func @transform_5(%arg0: i32) -> (i32, i32) {
    %c0_i32 = arith.constant 0 : i32
    %c0_i32_0 = arith.constant 0 : i32
    %c0_i32_1 = arith.constant 0 : i32
    return %c0_i32, %c0_i32_0 : i32, i32
  }
  func.func @transform_6(%arg0: i32) -> (i32, i32, i32) {
    %c0_i32 = arith.constant 0 : i32
    %c0_i32_0 = arith.constant 0 : i32
    %c0_i32_1 = arith.constant 0 : i32
    return %arg0, %c0_i32, %c0_i32_0 : i32, i32, i32
  }
}

</mosaic_0001>

<bundles_post_ra>
// kernel: tpu_custom_call.1
= control target key start
LH: loop header
LB: loop body
LE: loop exit
PB: predicated region body
PF: predicated region fallthrough
CT: control target
= control target key end

     0   :  { %11 = vsyncpa [#allocation3], 0  ;;  %s1254_s0 = inlined_call_operand.hbm [shape: f32[2,16,256], index: 0, kind: input, shape index: {}]   ;;  %s1255_s1 = inlined_call_operand.vmem [shape: f32[2,32], index: 1, kind: input, shape index: {}]   ;;  %s1256_s2 = inlined_call_operand.vmem [shape: f32[16,2], index: 2, kind: input, shape index: {}]   ;;  %s1257_s3 = inlined_call_operand.vmem [shape: f32[16,16], index: 3, kind: input, shape index: {}]   ;;  %s1258_s4 = inlined_call_operand.vmem [shape: f32[16,16], index: 4, kind: input, shape index: {}]   ;;  %s1259_s5 = inlined_call_operand.vmem [shape: f32[16,1], index: 5, kind: input, shape index: {}]   ;;  %s1260_s6 = inlined_call_operand.hbm [shape: f32[2,16,256], index: 6, kind: output, shape index: {}]  }
   0x1   :  { %13 = vsyncpa [#allocation3 + $0x1], 0 }
   0x2   :  { %14 = vsyncpa [#allocation4], 0 }
   0x3   :  { %16 = vsyncpa [#allocation4 + $0x1], 0  ;;  %s1027_s21 = smov 0   ;;  %s1029_s22 = smov 0  }
   0x4   :  { %s1031_s23 = smov 0   ;;  %s1033_s24 = smov 0  }
   0x5 LB: > { %s1048_s25 = sadd.s32 4294967295, %s980_s24   ;;  %s751_s26 = sadd.s32 4294967294, %s980_s24   ;;  %s980_s24 = sphi %s1033_s24, %s1273_s24   ;;  %s976_s23 = sphi %s1031_s23, %s1272_s23   ;;  %s972_s22 = sphi %s1029_s22, %s1271_s22   ;;  %s968_s21 = sphi %s1027_s21, %s1270_s21  }
   0x6   : > { %s1052_s27 = sadd.s32 1, %s980_s24   ;;  %s29_s28 = sadd.s32 1, %s976_s23 }
   0x7   : > { %s26_s29 = ssub.s32 %s980_s24, %s1052_s27  ;;  %p36_p0 = scmp.ne.s32.totalorder %s976_s23, %s972_s22 }
   0x8   : > { %p27_p1 = scmp.eq.s32.totalorder %s26_s29, 0  ;;  %p37_p2 = scmp.eq.s32.totalorder %s980_s24, 0 }
   0x9   : > { %p42_p3 = scmp.ne.s32.totalorder %s972_s22, %s968_s21  ;;  %p43_p4 = scmp.eq.s32.totalorder %s1048_s25, 0 }
   0xa   : > { %s1064_s30 = scalar_select %p27_p1, %s976_s23, %s29_s28  }
   0xb   : > { %p1066_p5 = por %p37_p2, %p36_p0  ;;  %p1070_p6 = por %p43_p4, %p42_p3 }
   0xc   : > { %p171_p7 = scmp.eq.s32.totalorder %s1048_s25, 1  ;;  %p177_p8 = scmp.eq.s32.totalorder %s751_s26, 1 }
   0xd   : > { %p836_p10 = scmp.lt.s32.totalorder %s980_s24, 2  ;;  %s212_s11 = sand.u32 1, %s976_s23  }
   0xe   : > { %p1077_p11 = por %p171_p7, %p36_p0  ;;  %p1081_p12 = por %p177_p8, %p42_p3 }
   0xf   : > { %s773_s12 = sshll.u32 %s980_s24, 9  ;;  %s754_s13 = sshll.u32 %s212_s11, 5 }
  0x10   : > { %s1264_s9 = scalar_select %p1077_p11, 1, 0 }
  0x11   : > { %s1265_s10 = scalar_select %p1081_p12, 1, 0 }
  0x12   : > { %s1090_s16 = scalar_lea.hbm %s1254_s0, %s773_s12  ;;  %s216_s17 = scalar_lea.vmem [#allocation2], %s754_s13 }
  0x13   : > { %s223_s18 = sshll.u32 %s216_s17, 4  ;;  %p1094_p13 = pnand %p836_p10, %p1066_p5  ;;  %s1098_s18 = int_to_ptr.vmem [resolvable:$true] %s223_s18 }
  0x14   : > { %s1100_s20 = scalar_lea.sflag [#allocation3], %s212_s11  ;;  %s884_s26 = scalar_lea.hbm %s1090_s16, 512 }
  0x15   : > { %p885_p0 = scmp.ne.s32.totalorder %s1090_s16, %s884_s26  ;;  %p886_p1 = pneg %p1094_p13 }
  0x16   : > { %s889_s7 = scalar_lea.hbm %s1254_s0, 1024  ;;  %p890_p4 = scmp.lt.u32.totalorder %s1090_s16, %s1254_s0 }
  0x17   : > { %p887_p2 = pnand %p886_p1, %p885_p0  ;;  %p891_p5 = scmp.lt.u32.totalorder %s889_s7, %s884_s26 }
  0x18   : > { %p893_p8 = scmp.lt.u32.totalorder %s884_s26, %s1090_s16 }
  0x19   : > { %p888_p3 = pneg %p887_p2  ;;  %p892_p7 = por %p891_p5, %p890_p4 }
  0x1b   : > { %p894_p10 = por %p893_p8, %p892_p7 }
  0x1d   : > { %p895_p9 = pnand %p894_p10, %p888_p3 }
  0x1f   : > { %898 = shalt.err (!%p895_p9)
}
  0x20   : > { %s899_s11 = scalar_lea.vmem %s1098_s18, 512  ;;  %s982_s14 = smov [#allocation2]  }
  0x21   : > { %p900_p0 = scmp.ne.s32.totalorder %s1098_s18, %s899_s11  ;;  %s904_s15 = sshll.u32 %s982_s14, 4  ;;  %s905_s15 = int_to_ptr.vmem [resolvable:$false] %s904_s15 }
  0x22   : > { %s906_s17 = scalar_lea.vmem %s905_s15, 1024  ;;  %p907_p11 = scmp.lt.s32.totalorder %s1098_s18, %s905_s15 }
  0x23   : > { %p902_p2 = pnand %p900_p0, %p886_p1  ;;  %p908_p4 = scmp.lt.s32.totalorder %s906_s17, %s899_s11 }
  0x25   : > { %p903_p12 = pneg %p902_p2  ;;  %p909_p5 = por %p908_p4, %p907_p11 }
  0x27   : > { %p910_p7 = pnand %p909_p5, %p903_p12 }
  0x29   : > { %913 = shalt.err (!%p910_p7)
}
  0x2a   : > { %s983_s26 = smov 256   ;;  %s984_s28 = smov 16  }
  0x2b   : > { %831 = dma.hbm_to_vmem [thread:$0]  (!%p1094_p13), %s1090_s16, 512, %s1098_s18, %s1100_s20, %s983_s26, %s983_s26, %s984_s28  }
  0x2c   : > { %p757_p9 = scmp.ge.s32.totalorder %s980_s24, 1  ;;  %p231_p1 = scmp.lt.s32.totalorder %s980_s24, 3 }
  0x2e   : > { %p232_p3 = pnand %p757_p9, %p231_p1 }
  0x2f   : > { %s1131_s29 = sand.u32 (!%p232_p3), 1, %s972_s22  }
  0x30   : > { %235 = sbr.rel (%p232_p3) target bundleno = 1030 (0x406), region = 44  ;;  %s758_s7 = sshll.u32 (!%p232_p3), %s1131_s29, 5 }
  0x31   : > { %s238_s12 = scalar_lea.sflag (!%p232_p3), [#allocation3], %s1131_s29  ;;  %s241_s13 = scalar_lea.vmem (!%p232_p3), [#allocation2], %s758_s7 }
  0x37   : > { %959 = dma.done.wait (%p1070_p6), %s238_s12, 512  }
  0x38   : > { %961 = vsyncadd (%p1070_p6), %s238_s12, 4294966784  ;;  %v1141_v0 = vld [vmem:[%s241_s13] sm:$0xff]  ;;  %v1143_v1 = vld [vmem:[%s241_s13 + $0x8] sm:$0xff]  ;;  %v985_v13 = vmov 0.0|0.0   ;;  %vm986_vm0 = vmmov 0   ;;  %v987_v14 = vmov 0.0  }
  0x39   : > { %v1145_v2 = vld [vmem:[%s241_s13 + $0x10] sm:$0xff]  ;;  %v274_v3 = vadd.f32 %v1143_v1, %v1141_v0  ;;  %v280_v4 = vmul.f32 %v1141_v0, %v1141_v0  ;;  %v281_v5 = vmul.f32 %v1143_v1, %v1143_v1  ;;  %v1153_v6 = vld [vmem:[%s241_s13 + $0x18] sm:$0xff]  ;;  %810 = vmatprep.subr.bf16.mxu0 %v985_v13  ;;  %795 = vmatprep.mubr.msk.f32.mxu0 %vm986_vm0, %v987_v14  ;;  %v315_v41 = vld [vmem:[%s1255_s1] sm:$0x3]  ;;  %vm316_vm5 = vcmask 261120   ;;  %s269_s11 = scalar_lea.vmem [#allocation5], %s758_s7 }
  0x3a   : > { %v822_v7 = vpack.c.bf16 %v1145_v2, %v1141_v0  ;;  %v282_v8 = vmul.f32 %v1145_v2, %v1145_v2  ;;  %v283_v9 = vmul.f32 %v1153_v6, %v1153_v6  ;;  %v277_v11 = vadd.f32 %v1153_v6, %v1145_v2  ;;  %v391_v42 = vld [vmem:[%s1256_s2] sm:$0xff]  ;;  %v392_v46 = vld [vmem:[%s1256_s2 + $0x8] sm:$0xff]  ;;  %s678_s14 = sshll.u32 %s269_s11, 4  ;;  %s774_s15 = sshll.u32 %s1048_s25, 9  ;;  %s1205_s14 = int_to_ptr.vmem [resolvable:$true] %s678_s14 }
  0x3b   : > { %275 = vadd.xlane.f32.xlu0 %v274_v3  ;;  %v284_v10 = vadd.f32 %v281_v5, %v280_v4  ;;  %vm393_vm6 = vcmask 15360   ;;  %vm400_vm7 = vcmask 1041408   ;;  %v479_v47 = vld [vmem:[%s1258_s4] sm:$0xff]  ;;  %vm483_vm8 = vcmask 130048   ;;  %v480_v52 = vld [vmem:[%s1258_s4 + $0x8] sm:$0xff]  ;;  %s1210_s28 = scalar_lea.hbm %s1260_s6, %s774_s15  ;;  %s665_s25 = scalar_lea.sflag [#allocation4], %s1131_s29 }
  0x3c   : > { %v287_v12 = vadd.f32 %v283_v9, %v282_v8  ;;  %807 = vmatprep.mubr.msk.f32.mxu1 %vm483_vm8, %v479_v47  ;;  %v820_v51 = vpack.c.bf16 %v1153_v6, %v1143_v1  ;;  %v565_v53 = vld [vmem:[%s1257_s3] sm:$0xff]  ;;  %v566_v54 = vld [vmem:[%s1257_s3 + $0x8] sm:$0xff]  ;;  %v988_v55 = vmov 0   ;;  %s914_s7 = scalar_lea.vmem %s1205_s14, 512  ;;  %p1267_p11 = scmp.ne.s32.totalorder %s1264_s9, 0 }
  0x3d   : > { %285 = vadd.xlane.f32.xlu1 %v284_v10  ;;  %878 = vset.pattern.permute.xlu0 %v988_v55  ;;  %v482_v56 = vld [vmem:[%s1259_s5 + $0x8] sm:$0xff]  ;;  %v481_v57 = vld [vmem:[%s1259_s5] sm:$0xff]  ;;  %p915_p6 = scmp.ne.s32.totalorder %s1205_s14, %s914_s7  ;;  %s989_s12 = smov [#allocation5]  }
  0x3e   : > { %879 = vset.pattern.permute.xlu1 %v988_v55  ;;  %s918_s13 = sshll.u32 %s989_s12, 4  ;;  %s919_s13 = int_to_ptr.vmem [resolvable:$false] %s918_s13 }
  0x3f   : > { %278 = vadd.xlane.f32.xlu0 %v277_v11  ;;  %p916_p12 = pnand %p915_p6, %p1267_p11  ;;  %s920_s8 = scalar_lea.vmem %s919_s13, 1024 }
  0x40   : > { %p921_p8 = scmp.lt.s32.totalorder %s1205_s14, %s919_s13  ;;  %p922_p10 = scmp.lt.s32.totalorder %s920_s8, %s914_s7 }
  0x41   : > { %288 = vadd.xlane.f32.xlu1 %v287_v12  ;;  %p917_p13 = pneg %p916_p12 }
  0x42   : > { %p923_p0 = por %p922_p10, %p921_p8 }
  0x44   : > { %p924_p2 = pnand %p923_p0, %p917_p13 }
  0xc8   : > { %v276_v15 = vpop.xlane.xlu0 %275 }
  0xc9   : > { %v290_v16 = vmul.f32 0.00390625, %v276_v15 }
  0xca   : > { %v286_v17 = vpop.xlane.xlu1 %285 }
  0xcb   : > { %v292_v18 = vmul.f32 %v290_v16, %v276_v15 }
  0xcc   : > { %v279_v19 = vpop.xlane.xlu0 %278 }
  0xcd   : > { %v294_v20 = vsub.f32 %v286_v17, %v292_v18  ;;  %v291_v21 = vmul.f32 0.00390625, %v279_v19 }
  0xce   : > { %v289_v22 = vpop.xlane.xlu1 %288 }
  0xcf   : > { %v297_v23 = vmul.f32 0.003921569, %v294_v20  ;;  %v293_v24 = vmul.f32 %v291_v21, %v279_v19  ;;  %v811_v25 = vpack.c.bf16 %v291_v21, %v290_v16 }
  0xd1   : > { %v299_v26 = vadd.f32 1e-05, %v297_v23  ;;  %v295_v27 = vsub.f32 %v289_v22, %v293_v24  ;;  %812 = vmatpush3.bf16.msra.mxu0 %v811_v25 }
  0xd2   : > { %813 = vmatprep.subr.bf16.mxu0 %v985_v13 }
  0xd3   : > { %880 = vrsqrt.f32 %v299_v26  ;;  %v298_v28 = vmul.f32 0.003921569, %v295_v27  ;;  %vm303_vm1 = vcmp.eq.f32.partialorder %v299_v26, inf  ;;  %v306_v35 = vand.u32 2147483648, %v299_v26 }
  0xd4   : > { %vm305_vm3 = vcmp.eq.f32.partialorder %v299_v26, 0.0 }
  0xd5   : > { %v300_v29 = vadd.f32 1e-05, %v298_v28 }
  0xd7   : > { %882 = vrsqrt.f32 %v300_v29  ;;  %vm310_vm2 = vcmp.eq.f32.partialorder %v300_v29, inf  ;;  %v313_v36 = vand.u32 2147483648, %v300_v29  ;;  %vm312_vm4 = vcmp.eq.f32.partialorder %v300_v29, 0.0 }
  0xdd   : > { %v881_v30 = vpop.eup %880 }
  0xde   : > { %v302_v31 = vmul.f32 %v881_v30, %v299_v26 }
  0xe0   : > { %v304_v33 = vsel %vm303_vm1, %v299_v26, %v302_v31 }
  0xe1   : > { %v883_v32 = vpop.eup %882  ;;  %v307_v38 = vsel %vm305_vm3, %v306_v35, %v304_v33 }
  0xe2   : > { %v309_v34 = vmul.f32 %v883_v32, %v300_v29 }
  0xe4   : > { %v311_v37 = vsel %vm310_vm2, %v300_v29, %v309_v34 }
  0xe5   : > { %v314_v39 = vsel %vm312_vm4, %v313_v36, %v311_v37 }
  0xe6   : > { %v814_v40 = vpack.c.bf16 %v314_v39, %v307_v38 }
  0xe8   : > { %815 = vmatpush3.bf16.msra.mxu0 %v814_v40 }
  0xeb   : > { %796 = vmatmul.mubr.msk.f32.vlgmr.msra.gmra.mrb[0].mxu0 %vm316_vm5, %v315_v41 }
  0xec   : > { %800 = vmatprep.mubr.msk.f32.mxu0 %vm393_vm6, %v391_v42 }
 0x1be   : > { %v386_v43 = vpop.f32.mrb[0].mxu0 }
 0x1bf   : > { %v390_v44 = vmax.f32 %v386_v43, 0.0  ;;  %v797_v45 = vpop.f32.mrb[1].mxu0 }
 0x1c1   : > { %798 = vmatprep.subr.msk.mxu0 %vm400_vm7, %v390_v44 }
 0x1c2   : > { %799 = vmatpush3.msk.msra.mxu0 %vm400_vm7, %v390_v44 }
 0x1c3   : > { %801 = vmatmul.mubr.msk.f32.vlgmr.msra.gmra.mrb[2].mxu0 %vm393_vm6, %v392_v46 }
 0x296   : > { %v802_v48 = vpop.f32.mrb[2].mxu0 }
 0x297   : > { %v470_v49 = vpop.f32.mrb[3].mxu0 }
 0x298   : > { %v816_v50 = vpack.c.bf16 %v802_v48, %v470_v49 }
 0x29a   : > { %817 = vmatprep.subr.bf16.mxu1 %v816_v50 }
 0x29b   : > { %819 = vmatpush3.bf16.msra.mxu1 %v816_v50 }
 0x29c   : > { %821 = vmatprep.subr.bf16.mxu1 %v820_v51 }
 0x29e   : > { %808 = vmatmul.mubr.msk.f32.vlgmr.msra.gmra.mrb[0].mxu1 %vm483_vm8, %v480_v52 }
 0x29f   : > { %823 = vmatpush1.bf16.msra.mxu1 %v822_v7  ;;  %647 = vmatprep.mubr.f32.mxu1 %v987_v14 }
 0x2a2   : > { %766 = vmatmul.mubr.msk.f32.vlgmr.msra.gmra.mrb[2].mxu1 %vm483_vm8, %v565_v53 }
 0x2a3   : > { %653 = vmatprep.mubr.f32.mxu1 %v987_v14 }
 0x2a6   : > { %767 = vmatmul.mubr.msk.f32.gmra.mrb[4].mxu1 %vm483_vm8, %v566_v54 }
 0x371   : > { %v809_v58 = vpop.f32.mrb[0].mxu1 }
 0x372   : > { %v562_v59 = vadd.f32 %v809_v58, %v482_v56  ;;  %v556_v60 = vpop.f32.mrb[1].mxu1 }
 0x373   : > { %v557_v61 = vadd.f32 %v556_v60, %v481_v57 }
 0x374   : > { %574 = vperm.xlu1 %879, %v562_v59  }
 0x375   : > { %569 = vperm.xlu0 %878, %v557_v61   ;;  %v649_v62 = vpop.f32.mrb[2].mxu1 }
 0x376   : > { %v651_v63 = vpop.f32.mrb[3].mxu1 }
 0x379   : > { %v655_v0 = vpop.f32.mrb[4].mxu1 }
 0x37a   : > { %v657_v1 = vpop.f32.mrb[5].mxu1 }
 0x3f3   : > { %v575_v2 = vpop.permute.xlu1 %574 }
 0x3f4   : > { %v570_v3 = vpop.permute.xlu0 %569  ;;  %v656_v4 = vadd.f32 %v655_v0, %v575_v2  ;;  %v658_v5 = vadd.f32 %v657_v1, %v575_v2 }
 0x3f5   : > { %v650_v6 = vadd.f32 %v649_v62, %v570_v3  ;;  %v652_v7 = vadd.f32 %v651_v63, %v570_v3 }
 0x3f6   : > { %662 = vst [vmem:[%s269_s11 + $0x10] sm:$0xff] %v656_v4  ;;  %663 = vst [vmem:[%s269_s11 + $0x18] sm:$0xff] %v658_v5 }
 0x3f7   : > { %660 = vst [vmem:[%s269_s11] sm:$0xff] %v650_v6  ;;  %661 = vst [vmem:[%s269_s11 + $0x8] sm:$0xff] %v652_v7 }
 0x3f8   : > { %927 = shalt.err (!%p924_p2)
}
 0x3f9   : > { %s928_s16 = scalar_lea.hbm %s1210_s28, 512  ;;  %s932_s20 = scalar_lea.hbm %s1260_s6, 1024 }
 0x3fa   : > { %p929_p4 = scmp.ne.s32.totalorder %s1210_s28, %s928_s16  ;;  %p933_p9 = scmp.lt.u32.totalorder %s1210_s28, %s1260_s6 }
 0x3fb   : > { %p934_p1 = scmp.lt.u32.totalorder %s932_s20, %s928_s16  ;;  %p936_p6 = scmp.lt.u32.totalorder %s928_s16, %s1210_s28 }
 0x3fc   : > { %p930_p5 = pnand %p929_p4, %p1267_p11 }
 0x3fd   : > { %p935_p3 = por %p934_p1, %p933_p9 }
 0x3fe   : > { %p931_p7 = pneg %p930_p5 }
 0x3ff   : > { %p937_p12 = por %p936_p6, %p935_p3 }
 0x401   : > { %p938_p13 = pnand %p937_p12, %p931_p7 }
 0x403   : > { %941 = shalt.err (!%p938_p13)
}
 0x404   : > { %s990_s17 = smov 256   ;;  %s991_s26 = smov 16  }
 0x405   : > { %826 = dma.vmem_to_hbm [thread:$0]  (%p1267_p11), %s1205_s14, 512, %s1210_s28, %s665_s25, %s990_s17, %s990_s17, %s991_s26  }
 0x406 PF: > { %s693_s7 = sand.u32 1, %s968_s21   ;;  %p1268_p8 = scmp.ne.s32.totalorder %s1265_s10, 0 }
 0x407   : > { %p1269_p10 = scmp.ge.s32.totalorder %s980_s24, 2  ;;  %s694_s12 = scalar_lea.sflag [#allocation4], %s693_s7 }
 0x409   : > { %p833_p0 = pnand %p1269_p10, %p1268_p8 }
 0x40b   : > { %963 = dma.done.wait (!%p833_p0), %s694_s12, 512  }
 0x40c   : > { %965 = vsyncadd (!%p833_p0), %s694_s12, 4294966784  ;;  %p19_p2 = scmp.ge.s32.totalorder %s1052_s27, 4   ;;  %s1270_s21 = smov %s972_s22 }
 0x40d   : > { %s1271_s22 = smov %s976_s23  ;;  %s1272_s23 = smov %s1064_s30 }
 0x40e   : > { %s1273_s24 = smov %s1052_s27  ;;  %21 = sbr.rel (!%p19_p2) target bundleno = 5 (0x5), region = 89 }
 0x415   :  { %699 = vsyncpa [#allocation3], 1 }
 0x416   :  { %701 = vsyncpa [#allocation3 + $0x1], 1 }
 0x417   :  { %702 = vsyncpa [#allocation4], 1 }
 0x418   :  { %704 = vsyncpa [#allocation4 + $0x1], 1 }

</bundles_post_ra>
